<compile_context>
chip_gen: v5e
topology: v5e:2x2
jax: 0.10.0
libtpu: 0.0.40
codegen_flags: <defaults>
</compile_context>

<pallas_src>
import jax
import jax.numpy as jnp
import numpy as np
from jax.experimental import pallas as pl
from jax.experimental.pallas import tpu as pltpu


# --------------------------------------------------------------------------- #
# Pallas kernel: scores matmul + online max / argmax over the dst axis
# --------------------------------------------------------------------------- #
def _node_max_kernel(a_ref, b_ref, max_ref, idx_ref):
    """One (batch, src_tile, dst_tile) grid step.

    a_ref:   (1, TA, C)  even-position (src) tokens, bf16, NOT normalized
             (positive per-row scale cannot change max/argmax over dst).
    b_ref:   (1, TB, C)  odd-position (dst) tokens, bf16, pre-normalized.
    max_ref: (1, 1, TA)  running raw max over dst (f32)   } lane-dense state,
    idx_ref: (1, 1, TA)  running argmax over dst (int32)  } resident across dst tiles.
    """
    bj = pl.program_id(2)            # dst-tile index (reduction axis, innermost)
    tb = b_ref.shape[1]              # static dst tile size

    a = a_ref[0]                     # (TA, C) bf16
    b = b_ref[0]                     # (TB, C) bf16

    # (TB, C) x (TA, C) -> (TB, TA): bf16 MXU matmul with f32 accumulate.
    # dst on sublanes / src on lanes so the reduced max/argmax land lane-dense.
    s = jax.lax.dot_general(b, a, (((1,), (1,)), ((), ())),
                            preferred_element_type=jnp.float32)

    tile_max = jnp.max(s, axis=0, keepdims=True)                        # (1, TA)
    row = jax.lax.broadcasted_iota(jnp.int32, s.shape, 0)
    # First-occurrence argmax inside the tile; the global dst offset is added
    # once on the reduced (1, TA) result, not on the full (TB, TA) tile.
    tile_arg = jnp.min(jnp.where(s == tile_max, row, jnp.int32(2 ** 30)),
                       axis=0, keepdims=True) + bj * tb                 # (1, TA)

    @pl.when(bj == 0)
    def _():
        max_ref[0] = tile_max
        idx_ref[0] = tile_arg

    @pl.when(bj > 0)
    def _():
        better = tile_max > max_ref[0]          # strict > keeps first occurrence
        idx_ref[0] = jnp.where(better, tile_arg, idx_ref[0])
        max_ref[0] = jnp.where(better, tile_max, max_ref[0])


def _pick_tile(dim, cap, granule):
    """Largest multiple-of-`granule` divisor of dim that is <= cap (full dim if small)."""
    if dim <= cap:
        return dim
    t = (cap // granule) * granule
    while t >= granule:
        if dim % t == 0:
            return t
        t -= granule
    # TODO(synk): for pathological token counts with no nice divisor, a cdiv grid
    # with in-kernel -inf masking would bound VMEM better than one full block.
    return dim


def _node_max_pallas(a_raw, b_raw, *, ta_cap=256, tb_cap=2048):
    """node_max (f32) / node_idx (int32) of (a/||a||) @ (b/||b||)^T, max over b."""
    n, t1, c = a_raw.shape
    t2 = b_raw.shape[1]

    # Pre-normalize b ONCE (single fused elementwise pass, folded into the bf16
    # cast by XLA) instead of re-normalizing inside every grid step.
    b32 = b_raw.astype(jnp.float32)
    b_hat = (b32 * jax.lax.rsqrt(jnp.sum(b32 * b32, axis=-1, keepdims=True))
             ).astype(jnp.bfloat16)
    a_bf = a_raw.astype(jnp.bfloat16)          # raw; normalization deferred below

    # TA sits on the lane axis of the output state -> multiple of 128 (or full).
    ta = _pick_tile(t1, ta_cap, 128)
    tb = _pick_tile(t2, tb_cap, 8)
    grid = (n, t1 // ta, t2 // tb)             # dst (reduction) axis last

    raw_max, node_idx = pl.pallas_call(
        _node_max_kernel,
        out_shape=(jax.ShapeDtypeStruct((n, 1, t1), jnp.float32),
                   jax.ShapeDtypeStruct((n, 1, t1), jnp.int32)),
        grid_spec=pltpu.PrefetchScalarGridSpec(
            num_scalar_prefetch=0,
            grid=grid,
            in_specs=[
                pl.BlockSpec((1, ta, c), lambda bi, ai, bj: (bi, ai, 0)),
                pl.BlockSpec((1, tb, c), lambda bi, ai, bj: (bi, bj, 0)),
            ],
            out_specs=[
                pl.BlockSpec((1, 1, ta), lambda bi, ai, bj: (bi, 0, ai)),
                pl.BlockSpec((1, 1, ta), lambda bi, ai, bj: (bi, 0, ai)),
            ],
        ),
        compiler_params=pltpu.CompilerParams(
            dimension_semantics=("parallel", "parallel", "arbitrary"),
            vmem_limit_bytes=32 * 1024 * 1024),
    )(a_bf, b_hat)

    raw_max = raw_max[:, 0, :]
    node_idx = node_idx[:, 0, :]
    # Deferred normalization of a: scale the accumulated raw max once per src
    # row (positive scale -> same argmax).  One cheap fused pass in XLA.
    a32 = a_raw.astype(jnp.float32)
    node_max = raw_max * jax.lax.rsqrt(jnp.sum(a32 * a32, axis=-1))
    return node_max, node_idx


# --------------------------------------------------------------------------- #
# merge / unmerge closures (index-driven gather/scatter: plain JAX)
# --------------------------------------------------------------------------- #
def _build_merge_unmerge(node_max, node_idx, t, r, is_upsample):
    # TODO(synk): descending argsort + data-dependent scatter/gather have no clean
    # Pallas TPU equivalent; they stay in plain JAX (XLA sort / .at[] scatter).
    edge_idx = jnp.argsort(-node_max, axis=-1, stable=True)        # descending
    unm_idx = edge_idx[:, r:]                                      # (n, t1 - r)
    src_idx = edge_idx[:, :r]                                      # (n, r)
    dst_idx = jnp.take_along_axis(node_idx, src_idx, axis=-1)      # (n, r)

    def merge(x, mode="mean"):
        src, dst = x[:, 0::2, :], x[:, 1::2, :]
        nb, _, c = src.shape
        batch = jnp.arange(nb)[:, None]
        src_g = jnp.take_along_axis(
            src, jnp.broadcast_to(src_idx[:, :, None], (nb, r, c)), axis=1)
        if is_upsample:                                            # scatter_add
            return dst.at[batch, dst_idx, :].add(src_g)
        if mode == "mean":
            # torch scatter_reduce(reduce='mean', include_self=True)
            summed = jnp.zeros_like(dst).at[batch, dst_idx, :].add(src_g)
            counts = jnp.zeros(dst.shape[:2], dst.dtype).at[batch, dst_idx].add(1)
            return (dst + summed) / (1.0 + counts)[..., None]
        if mode in ("sum", "add"):
            return dst.at[batch, dst_idx, :].add(src_g)
        raise NotImplementedError(f"merge mode {mode!r}")

    def unmerge(x):
        unm_len = unm_idx.shape[1]
        unm, dst = x[:, :unm_len, :], x[:, unm_len:, :]
        nb, _, c = dst.shape
        batch = jnp.arange(nb)[:, None]
        src = jnp.take_along_axis(
            dst, jnp.broadcast_to(dst_idx[:, :, None], (nb, r, c)), axis=1)
        out = jnp.zeros((nb, t, c), dtype=x.dtype)
        out = out.at[:, 1::2, :].set(dst)
        if unm_len > 0:
            out = out.at[batch, 2 * unm_idx, :].set(unm)
        out = out.at[batch, 2 * src_idx, :].set(src)
        return out

    return merge, unmerge


def bipartite_soft_matching(metric, *, is_upsample=False):
    """Forward of BipartiteSoftMatching: returns (merge, unmerge) closures.

    metric: (n, t, c).  Like the PyTorch module, self.r is ignored in the
    forward; r is recomputed as min(1008611, t // 2).
    """
    n, t, c = metric.shape
    protected = 0
    r = min(1008611, (t - protected) // 2)
    a = metric[:, 0::2, :]                    # even / src tokens
    b = metric[:, 1::2, :]                    # odd  / dst tokens
    node_max, node_idx = _node_max_pallas(a, b)
    return _build_merge_unmerge(node_max, node_idx, t, r, is_upsample)


# --------------------------------------------------------------------------- #
# References for correctness checking
# --------------------------------------------------------------------------- #
def _node_ref(metric):
    """Full-precision (f32) scores / node_max / node_idx, mirroring PyTorch."""
    m = metric.astype(jnp.float32)
    m = m / jnp.linalg.norm(m, axis=-1, keepdims=True)
    a, b = m[:, 0::2, :], m[:, 1::2, :]
    scores = jnp.einsum("nic,njc->nij", a, b, precision=jax.lax.Precision.HIGHEST)
    return scores, jnp.max(scores, axis=-1), jnp.argmax(scores, axis=-1).astype(jnp.int32)


def _ref_closures_np(node_max, node_idx, t, r, is_upsample):
    """Independent numpy loop reference for the merge/unmerge index bookkeeping."""
    node_max = np.asarray(node_max)
    node_idx = np.asarray(node_idx)
    edge_idx = np.argsort(-node_max, axis=-1, kind="stable")
    unm_idx = edge_idx[:, r:]
    src_idx = edge_idx[:, :r]
    dst_idx = np.take_along_axis(node_idx, src_idx, axis=-1)

    def merge(x, mode="mean"):
        x = np.asarray(x)
        src, dst = x[:, 0::2, :], x[:, 1::2, :]
        nb = src.shape[0]
        if is_upsample or mode in ("sum", "add"):
            out = dst.copy()
            for bi in range(nb):
                for k in range(r):
                    out[bi, dst_idx[bi, k]] += src[bi, src_idx[bi, k]]
            return out
        acc = dst.astype(np.float64).copy()
        cnt = np.ones(dst.shape[:2], dtype=np.float64)
        for bi in range(nb):
            for k in range(r):
                j = dst_idx[bi, k]
                acc[bi, j] += src[bi, src_idx[bi, k]]
                cnt[bi, j] += 1.0
        return acc / cnt[..., None]

    def unmerge(x):
        x = np.asarray(x)
        unm_len = unm_idx.shape[1]
        unm, dst = x[:, :unm_len, :], x[:, unm_len:, :]
        nb, _, c = dst.shape
        out = np.zeros((nb, t, c), dtype=x.dtype)
        out[:, 1::2, :] = dst
        for bi in range(nb):
            for k in range(unm_len):
                out[bi, 2 * unm_idx[bi, k]] = unm[bi, k]
            for k in range(r):
                out[bi, 2 * src_idx[bi, k]] = dst[bi, dst_idx[bi, k]]
        return out

    return merge, unmerge


if __name__ == "__main__":
    key = jax.random.PRNGKey(0)
    k_m, k_x = jax.random.split(key, 2)

    N, T, C = 2, 16, 32          # batch=2, tokens=16, metric dim=32
    CF = 64                      # feature dim of the tensor being merged
    R = T // 2

    metric = jax.random.normal(k_m, (N, T, C), dtype=jnp.float32)
    x = jax.random.normal(k_x, (N, T, CF), dtype=jnp.float32)

    # ---- kernel vs f32 reference: the matching itself ----
    a, b = metric[:, 0::2, :], metric[:, 1::2, :]
    node_max, node_idx = _node_max_pallas(a, b)
    node_max, node_idx = jax.block_until_ready((node_max, node_idx))
    assert node_max.shape == (N, T // 2) and node_idx.shape == (N, T // 2)

    scores_ref, node_max_ref, node_idx_ref = _node_ref(metric)
    # bf16 MXU inputs -> loose tolerance; argmax validated via the score it attains
    # (robust to exact-tie flips between bf16 kernel and f32 reference).
    assert jnp.allclose(node_max, node_max_ref, atol=2e-2, rtol=2e-2), "node_max mismatch"
    picked = jnp.take_along_axis(scores_ref, node_idx[..., None].astype(jnp.int32),
                                 axis=-1)[..., 0]
    assert jnp.allclose(picked, node_max_ref, atol=2e-2), "node_idx not a (near-)argmax"

    # ---- full forward semantics: (merge, unmerge) closures, both modes ----
    for is_up in (False, True):
        merge, unmerge = bipartite_soft_matching(metric, is_upsample=is_up)
        merge_np, unmerge_np = _ref_closures_np(node_max, node_idx, T, R, is_up)

        merged = jax.block_until_ready(merge(x))
        merged_np = merge_np(x)
        assert merged.shape == (N, T // 2, CF)
        assert jnp.allclose(merged, merged_np, atol=1e-4, rtol=1e-4), "merge mismatch"

        unmerged = jax.block_until_ready(unmerge(merged))
        unmerged_np = unmerge_np(np.asarray(merged))
        assert unmerged.shape == (N, T, CF)
        assert jnp.allclose(unmerged, unmerged_np, atol=1e-4, rtol=1e-4), "unmerge mismatch"

    print("KERNEL_OK")
</pallas_src>

<mosaic_0001>
module attributes {stable_mosaic.version = 11 : i64} {
  func.func @_node_max_kernel(%arg0: i32, %arg1: i32, %arg2: i32, %arg3: memref<1x8x32xbf16, #tpu.memory_space<vmem>>, %arg4: memref<1x8x32xbf16, #tpu.memory_space<vmem>>, %arg5: memref<1x1x8xf32, #tpu.memory_space<vmem>>, %arg6: memref<1x1x8xi32, #tpu.memory_space<vmem>>) attributes {dimension_semantics = [#tpu.dimension_semantics<parallel>, #tpu.dimension_semantics<parallel>, #tpu.dimension_semantics<arbitrary>], iteration_bounds = array<i64: 2, 1, 1>, scalar_prefetch = 0 : i64, scratch_operands = 0 : i64, tpu.core_type = #tpu.core_type<tc>, window_params = [{transform_indices = @transform_0, window_bounds = array<i64: 1, 8, 32>}, {transform_indices = @transform_1, window_bounds = array<i64: 1, 8, 32>}, {transform_indices = @transform_2, window_bounds = array<i64: 1, 1, 8>}, {transform_indices = @transform_3, window_bounds = array<i64: 1, 1, 8>}]} {
    %c0 = arith.constant 0 : index
    %c0_0 = arith.constant 0 : index
    %c0_1 = arith.constant 0 : index
    %0 = vector.load %arg3[%c0, %c0_0, %c0_1] : memref<1x8x32xbf16, #tpu.memory_space<vmem>>, vector<1x8x32xbf16>
    %1 = vector.shape_cast %0 : vector<1x8x32xbf16> to vector<8x32xbf16>
    %c0_2 = arith.constant 0 : index
    %c0_3 = arith.constant 0 : index
    %c0_4 = arith.constant 0 : index
    %2 = vector.load %arg4[%c0_2, %c0_3, %c0_4] : memref<1x8x32xbf16, #tpu.memory_space<vmem>>, vector<1x8x32xbf16>
    %3 = vector.shape_cast %2 : vector<1x8x32xbf16> to vector<8x32xbf16>
    %cst = arith.constant dense<0.000000e+00> : vector<8x8xf32>
    %4 = tpu.matmul %3, %1, %cst {dimension_numbers = #tpu.dot_dimension_numbers<[1], [1], [0], [0], [0, 0, 1, 0], [], []>} : vector<8x32xbf16>, vector<8x32xbf16>, vector<8x8xf32> -> vector<8x8xf32>
    %cst_5 = arith.constant dense<0xFF800000> : vector<8xf32>
    %5 = vector.multi_reduction <maximumf>, %4, %cst_5 [0] : vector<8x8xf32> to vector<8xf32>
    %6 = vector.shape_cast %5 : vector<8xf32> to vector<1x8xf32>
    %7 = tpu.iota {dimensions = array<i32: 0>} : vector<8x8xi32>
    %8 = vector.broadcast %6 : vector<1x8xf32> to vector<8x8xf32>
    %9 = arith.cmpf oeq, %4, %8 : vector<8x8xf32>
    %c1073741824_i32 = arith.constant 1073741824 : i32
    %10 = vector.broadcast %c1073741824_i32 : i32 to vector<8x8xi32>
    %11 = arith.select %9, %7, %10 : vector<8x8xi1>, vector<8x8xi32>
    %cst_6 = arith.constant dense<2147483647> : vector<8xi32>
    %12 = vector.multi_reduction <minsi>, %11, %cst_6 [0] : vector<8x8xi32> to vector<8xi32>
    %13 = vector.shape_cast %12 : vector<8xi32> to vector<1x8xi32>
    %c8_i32 = arith.constant 8 : i32
    %14 = arith.muli %arg2, %c8_i32 : i32
    %15 = vector.broadcast %14 : i32 to vector<1x8xi32>
    %16 = arith.addi %13, %15 : vector<1x8xi32>
    %c0_i32 = arith.constant 0 : i32
    %17 = arith.cmpi eq, %arg2, %c0_i32 : i32
    %18 = arith.extui %17 : i1 to i32
    %c0_i32_7 = arith.constant 0 : i32
    %19 = arith.cmpi ne, %18, %c0_i32_7 : i32
    scf.if %19 {
      %c0_10 = arith.constant 0 : index
      %c0_11 = arith.constant 0 : index
      %c0_12 = arith.constant 0 : index
      %23 = vector.load %arg5[%c0_10, %c0_11, %c0_12] : memref<1x1x8xf32, #tpu.memory_space<vmem>>, vector<1x1x8xf32>
      %24 = vector.shape_cast %23 : vector<1x1x8xf32> to vector<1x8xf32>
      %25 = vector.shape_cast %6 : vector<1x8xf32> to vector<1x1x8xf32>
      tpu.vector_store %arg5[%c0_10, %c0_11, %c0_12], %25 {strides = array<i32>} : memref<1x1x8xf32, #tpu.memory_space<vmem>>, vector<1x1x8xf32>,
      %c0_13 = arith.constant 0 : index
      %c0_14 = arith.constant 0 : index
      %c0_15 = arith.constant 0 : index
      %26 = vector.load %arg6[%c0_13, %c0_14, %c0_15] : memref<1x1x8xi32, #tpu.memory_space<vmem>>, vector<1x1x8xi32>
      %27 = vector.shape_cast %26 : vector<1x1x8xi32> to vector<1x8xi32>
      %28 = vector.shape_cast %16 : vector<1x8xi32> to vector<1x1x8xi32>
      tpu.vector_store %arg6[%c0_13, %c0_14, %c0_15], %28 {strides = array<i32>} : memref<1x1x8xi32, #tpu.memory_space<vmem>>, vector<1x1x8xi32>,
    } else {
    }
    %c0_i32_8 = arith.constant 0 : i32
    %20 = arith.cmpi sgt, %arg2, %c0_i32_8 : i32
    %21 = arith.extui %20 : i1 to i32
    %c0_i32_9 = arith.constant 0 : i32
    %22 = arith.cmpi ne, %21, %c0_i32_9 : i32
    scf.if %22 {
      %c0_10 = arith.constant 0 : index
      %c0_11 = arith.constant 0 : index
      %c0_12 = arith.constant 0 : index
      %23 = vector.load %arg5[%c0_10, %c0_11, %c0_12] : memref<1x1x8xf32, #tpu.memory_space<vmem>>, vector<1x1x8xf32>
      %24 = vector.shape_cast %23 : vector<1x1x8xf32> to vector<1x8xf32>
      %25 = arith.cmpf ogt, %6, %24 : vector<1x8xf32>
      %c0_13 = arith.constant 0 : index
      %c0_14 = arith.constant 0 : index
      %c0_15 = arith.constant 0 : index
      %26 = vector.load %arg6[%c0_13, %c0_14, %c0_15] : memref<1x1x8xi32, #tpu.memory_space<vmem>>, vector<1x1x8xi32>
      %27 = vector.shape_cast %26 : vector<1x1x8xi32> to vector<1x8xi32>
      %28 = arith.select %25, %16, %27 : vector<1x8xi1>, vector<1x8xi32>
      %c0_16 = arith.constant 0 : index
      %c0_17 = arith.constant 0 : index
      %c0_18 = arith.constant 0 : index
      %29 = vector.load %arg6[%c0_16, %c0_17, %c0_18] : memref<1x1x8xi32, #tpu.memory_space<vmem>>, vector<1x1x8xi32>
      %30 = vector.shape_cast %29 : vector<1x1x8xi32> to vector<1x8xi32>
      %31 = vector.shape_cast %28 : vector<1x8xi32> to vector<1x1x8xi32>
      tpu.vector_store %arg6[%c0_16, %c0_17, %c0_18], %31 {strides = array<i32>} : memref<1x1x8xi32, #tpu.memory_space<vmem>>, vector<1x1x8xi32>,
      %c0_19 = arith.constant 0 : index
      %c0_20 = arith.constant 0 : index
      %c0_21 = arith.constant 0 : index
      %32 = vector.load %arg5[%c0_19, %c0_20, %c0_21] : memref<1x1x8xf32, #tpu.memory_space<vmem>>, vector<1x1x8xf32>
      %33 = vector.shape_cast %32 : vector<1x1x8xf32> to vector<1x8xf32>
      %34 = arith.select %25, %6, %33 : vector<1x8xi1>, vector<1x8xf32>
      %c0_22 = arith.constant 0 : index
      %c0_23 = arith.constant 0 : index
      %c0_24 = arith.constant 0 : index
      %35 = vector.load %arg5[%c0_22, %c0_23, %c0_24] : memref<1x1x8xf32, #tpu.memory_space<vmem>>, vector<1x1x8xf32>
      %36 = vector.shape_cast %35 : vector<1x1x8xf32> to vector<1x8xf32>
      %37 = vector.shape_cast %34 : vector<1x8xf32> to vector<1x1x8xf32>
      tpu.vector_store %arg5[%c0_22, %c0_23, %c0_24], %37 {strides = array<i32>} : memref<1x1x8xf32, #tpu.memory_space<vmem>>, vector<1x1x8xf32>,
    } else {
    }
    return
  }
  func.func @transform_0(%arg0: i32, %arg1: i32, %arg2: i32) -> (i32, i32, i32) {
    %c0_i32 = arith.constant 0 : i32
    %c0_i32_0 = arith.constant 0 : i32
    return %arg0, %arg1, %c0_i32 : i32, i32, i32
  }
  func.func @transform_1(%arg0: i32, %arg1: i32, %arg2: i32) -> (i32, i32, i32) {
    %c0_i32 = arith.constant 0 : i32
    %c0_i32_0 = arith.constant 0 : i32
    return %arg0, %arg2, %c0_i32 : i32, i32, i32
  }
  func.func @transform_2(%arg0: i32, %arg1: i32, %arg2: i32) -> (i32, i32, i32) {
    %c0_i32 = arith.constant 0 : i32
    %c0_i32_0 = arith.constant 0 : i32
    return %arg0, %c0_i32, %arg1 : i32, i32, i32
  }
  func.func @transform_3(%arg0: i32, %arg1: i32, %arg2: i32) -> (i32, i32, i32) {
    %c0_i32 = arith.constant 0 : i32
    %c0_i32_0 = arith.constant 0 : i32
    return %arg0, %c0_i32, %arg1 : i32, i32, i32
  }
}

</mosaic_0001>

<bundles_post_ra>
// kernel: tpu_custom_call.1
= control target key start
LH: loop header
LB: loop body
LE: loop exit
PB: predicated region body
PF: predicated region fallthrough
CT: control target
= control target key end

     0   :  { %9 = vsyncpa [#allocation3], 0  ;;  %s932_s0 = inlined_call_operand.hbm [shape: bf16[2,8,32], index: 0, kind: input, shape index: {}]   ;;  %s933_s1 = inlined_call_operand.hbm [shape: bf16[2,8,32], index: 1, kind: input, shape index: {}]   ;;  %s934_s2 = inlined_call_operand.hbm [shape: f32[2,1,8], index: 2, kind: output, shape index: {0}]   ;;  %s935_s3 = inlined_call_operand.hbm [shape: s32[2,1,8], index: 3, kind: output, shape index: {1}]  }
   0x1   :  { %11 = vsyncpa [#allocation3 + $0x1], 0 }
   0x2   :  { %12 = vsyncpa [#allocation6], 0 }
   0x3   :  { %14 = vsyncpa [#allocation6 + $0x1], 0 }
   0x4   :  { %15 = vsyncpa [#allocation4], 0 }
   0x5   :  { %17 = vsyncpa [#allocation4 + $0x1], 0 }
   0x6   :  { %18 = vsyncpa [#allocation9], 0 }
   0x7   :  { %20 = vsyncpa [#allocation9 + $0x1], 0  ;;  %s783_s12 = smov 0   ;;  %s785_s13 = smov 0  }
   0x8   :  { %s787_s14 = smov 0   ;;  %s789_s15 = smov 0  }
   0x9   :  { %s791_s16 = smov 0   ;;  %s793_s17 = smov 0  }
   0xa LB: > { %s497_s18 = sadd.s32 4294967295, %s761_s17   ;;  %s498_s19 = sadd.s32 4294967294, %s761_s17   ;;  %s761_s17 = sphi %s793_s17, %s26_s17   ;;  %s757_s16 = sphi %s791_s16, %s944_s16   ;;  %s753_s15 = sphi %s789_s15, %s943_s15   ;;  %s749_s14 = sphi %s787_s14, %s942_s14   ;;  %s745_s13 = sphi %s785_s13, %s941_s13   ;;  %s741_s12 = sphi %s783_s12, %s940_s12  }
   0xb   : > { %s45_s20 = sadd.s32 1, %s757_s16  ;;  %s54_s21 = sadd.s32 1, %s749_s14 }
   0xc   : > { %p47_p0 = scmp.ge.s32.totalorder %s45_s20, 2  ;;  %p61_p1 = scmp.ne.s32.totalorder %s749_s14, %s745_s13 }
   0xd   : > { %p62_p2 = scmp.eq.s32.totalorder %s761_s17, 0  ;;  %p67_p3 = scmp.ne.s32.totalorder %s745_s13, %s741_s12 }
   0xe   : > { %s946_s20 = smov (%p47_p0, %s45_s20), 0  ;;  %p68_p5 = scmp.eq.s32.totalorder %s497_s18, 0 }
   0xf   : > { %p824_p4 = por %p62_p2, %p61_p1  ;;  %s49_s23 = ssub.s32 %s757_s16, %s946_s20 }
  0x10   : > { %p121_p6 = scmp.eq.s32.totalorder %s497_s18, 1  ;;  %p52_p7 = scmp.eq.s32.totalorder %s49_s23, 0 }
  0x11   : > { %p830_p8 = por %p68_p5, %p67_p3  ;;  %p127_p10 = scmp.eq.s32.totalorder %s498_s19, 1 }
  0x12   : > { %p834_p9 = por %p121_p6, %p61_p1  ;;  %p500_p12 = scmp.ge.s32.totalorder %s761_s17, 2 }
  0x13   : > { %s839_s26 = scalar_select %p52_p7, %s749_s14, %s54_s21  }
  0x14   : > { %p841_p11 = por %p127_p10, %p67_p3  ;;  %p533_p13 = scmp.lt.s32.totalorder %s761_s17, 2 }
  0x15   : > { %s175_s28 = sand.u32 1, %s749_s14   ;;  %s502_s30 = sshll.u32 %s757_s16, 2 }
  0x16   : > { %s501_s29 = sshll.u32 %s175_s28, 2  ;;  %s184_s6 = scalar_lea.hbm %s932_s0, %s502_s30 }
  0x17   : > { %s179_s7 = scalar_lea.vmem [#allocation2], %s501_s29  ;;  %s186_s9 = sshll.u32 %s184_s6, 4  ;;  %s187_s9 = int_to_ptr.hbm [resolvable:$true] %s186_s9 }
  0x18   : > { %s188_s8 = sshll.u32 %s179_s7, 4  ;;  %p520_p0 = pnand %p533_p13, %p824_p4  ;;  %s189_s8 = int_to_ptr.vmem [resolvable:$true] %s188_s8 }
  0x19   : > { %p505_p1 = scmp.ge.s32.totalorder %s761_s17, 1  ;;  %p213_p2 = scmp.lt.s32.totalorder %s761_s17, 3 }
  0x1a   : > { %s176_s10 = scalar_lea.sflag [#allocation3], %s175_s28  ;;  %s204_s19 = scalar_lea.hbm %s933_s1, %s502_s30 }
  0x1b   : > { %522 = dma.hbm_to_vmem [thread:$0]  (!%p520_p0), %s187_s9, 64, %s189_s8, %s176_s10  }
  0x1c   : > { %p214_p3 = pnand %p505_p1, %p213_p2  ;;  %s199_s21 = scalar_lea.vmem [#allocation5], %s501_s29 }
  0x1d   : > { %s208_s23 = sshll.u32 %s199_s21, 4  ;;  %s206_s4 = sshll.u32 %s204_s19, 4  ;;  %s209_s23 = int_to_ptr.vmem [resolvable:$true] %s208_s23  ;;  %s207_s4 = int_to_ptr.hbm [resolvable:$true] %s206_s4 }
  0x1e   : > { %s196_s5 = scalar_lea.sflag [#allocation6], %s175_s28  ;;  %217 = sbr.rel (%p214_p3) target bundleno = 205 (0xcd), region = 28 }
  0x1f   : > { %525 = dma.hbm_to_vmem [thread:$0]  (!%p520_p0), %s207_s4, 64, %s209_s23, %s196_s5  }
  0x20   : > { %s860_s22 = sand.u32 (!%p214_p3), 1, %s745_s13  }
  0x21   : > { %s506_s6 = sshll.u32 (!%p214_p3), %s860_s22, 2  ;;  %s220_s7 = scalar_lea.sflag (!%p214_p3), [#allocation3], %s860_s22 }
  0x22   : > { %s223_s8 = scalar_lea.vmem (!%p214_p3), [#allocation2], %s506_s6 }
  0x23   : > { %724 = dma.done.wait (%p830_p8), %s220_s7, 64  }
  0x24   : > { %726 = vsyncadd (%p830_p8), %s220_s7, 4294967232  ;;  %s230_s29 = scalar_lea.sflag [#allocation6], %s860_s22  ;;  %s233_s28 = scalar_lea.vmem [#allocation5], %s506_s6 }
  0x25   : > { %728 = dma.done.wait (%p830_p8), %s230_s29, 64  }
  0x26   : > { %730 = vsyncadd (%p830_p8), %s230_s29, 4294967232  ;;  %vm268_vm0 = vcmask 261120   ;;  %v266_v0 = vld [vmem:[%s223_s8] sm:$0xf]  ;;  %v267_v2 = vld [vmem:[%s233_s28] sm:$0xf]  ;;  %s347_s24 = scalar_lea.hbm %s934_s2, %s753_s15  ;;  %v296_v8 = vlaneseq }
  0x27   : > { %v273_v1 = vsel %vm268_vm0, %v266_v0, 0  ;;  %vm288_vm1 = vcmask 64512   ;;  %s258_s10 = scalar_lea.vmem [#allocation7], %s860_s22  ;;  %s351_s18 = sshll.u32 %s347_s24, 4  ;;  %vm317_vm2 = vcmask 57344   ;;  %s352_s18 = int_to_ptr.hbm [resolvable:$true] %s351_s18 }
  0x28   : > { %282 = vmatpush.bf16.xpose.msra.mxu0 %v273_v1  ;;  %s349_s11 = sshll.u32 %s258_s10, 4  ;;  %v297_v12 = vshrl.u32 %v296_v8, 7  ;;  %s334_s19 = scalar_lea.sflag [#allocation4], %s860_s22  ;;  %s350_s11 = int_to_ptr.vmem [resolvable:$true] %s349_s11 }
  0x29   : > { %s657_s21 = sshra.s32 %s352_s18, 4  ;;  %s663_s6 = scalar_lea.hbm %s934_s2, 2  ;;  %s658_s21 = int_to_ptr.hbm [resolvable:$true] %s657_s21 }
  0x2a   : > { %s659_s23 = scalar_lea.hbm %s658_s21, 1  ;;  %p664_p7 = scmp.lt.s32.totalorder %s658_s21, %s934_s2 }
  0x2b   : > { %p660_p4 = scmp.ne.s32.totalorder %s658_s21, %s659_s23  ;;  %p665_p8 = scmp.lt.s32.totalorder %s663_s6, %s659_s23 }
  0x2d   : > { %p661_p5 = pnand %p660_p4, %p834_p9  ;;  %p666_p10 = por %p665_p8, %p664_p7 }
  0x2f   : > { %508 = vmatmul.msk.bf16.vlgmr.msra.gmra.mxu0 %vm268_vm0, %v267_v2  ;;  %p662_p6 = pneg %p661_p5 }
  0x31   : > { %p667_p13 = pnand %p666_p10, %p662_p6 }
  0xac   : > { %v284_v3 = vpop.f32.mrf.mxu0 }
  0xad   : > { %v289_v4 = vsel %vm288_vm1, %v284_v3, -inf }
  0xae   : > { %v290_v5 = vrot.slane %v289_v4, 4 }
  0xb0   : > { %v291_v6 = vmax.f32 %v289_v4, %v290_v5 }
  0xb2   : > { %v292_v7 = vrot.slane %v291_v6, 2 }
  0xb4   : > { %v293_v9 = vmax.f32 %v291_v6, %v292_v7  ;;  %v286_v10 = vpop.f32.mrf.mxu0 }
  0xb6   : > { %v294_v11 = vrot.slane %v293_v9, 1 }
  0xb8   : > { %v295_v13 = vmax.f32 %v293_v9, %v294_v11 }
  0xba   : > { %vm298_vm3 = vcmp.eq.f32.partialorder %v284_v3, %v295_v13  ;;  %318 = vst.msk [vmem:[%s258_s10] sm:$0x1] %vm317_vm2, %v295_v13 }
  0xbb   : > { %v299_v14 = vsel %vm298_vm3, %v297_v12, 1073741824 }
  0xbc   : > { %670 = shalt.err (!%p667_p13)
}
  0xbd   : > { %515 = dma.vmem_to_hbm [thread:$0]  (%p834_p9), %s350_s11, 16, %s352_s18, %s334_s19   ;;  %v300_v15 = vsel %vm288_vm1, %v299_v14, 2147483647 }
  0xbe   : > { %v301_v16 = vrot.slane %v300_v15, 4  ;;  %s361_s30 = scalar_lea.hbm %s935_s3, %s753_s15  ;;  %s264_s9 = scalar_lea.vmem [#allocation8], %s860_s22 }
  0xbf   : > { %s363_s24 = sshll.u32 %s264_s9, 4  ;;  %s365_s10 = sshll.u32 %s361_s30, 4  ;;  %s364_s24 = int_to_ptr.vmem [resolvable:$true] %s363_s24  ;;  %s366_s10 = int_to_ptr.hbm [resolvable:$true] %s365_s10 }
  0xc0   : > { %vm302_vm4 = vcmp.lt.s32.totalorder %v300_v15, %v301_v16  ;;  %s338_s11 = scalar_lea.sflag [#allocation9], %s860_s22  ;;  %s685_s18 = sshra.s32 %s366_s10, 4  ;;  %s686_s18 = int_to_ptr.hbm [resolvable:$true] %s685_s18 }
  0xc1   : > { %v303_v17 = vsel %vm302_vm4, %v300_v15, %v301_v16  ;;  %s687_s19 = scalar_lea.hbm %s686_s18, 1  ;;  %s691_s23 = scalar_lea.hbm %s935_s3, 2 }
  0xc2   : > { %v304_v18 = vrot.slane %v303_v17, 2  ;;  %p688_p0 = scmp.ne.s32.totalorder %s686_s18, %s687_s19  ;;  %p692_p3 = scmp.lt.s32.totalorder %s686_s18, %s935_s3 }
  0xc3   : > { %p693_p4 = scmp.lt.s32.totalorder %s691_s23, %s687_s19 }
  0xc4   : > { %vm305_vm5 = vcmp.lt.s32.totalorder %v303_v17, %v304_v18  ;;  %p689_p1 = pnand %p688_p0, %p834_p9 }
  0xc5   : > { %v306_v19 = vsel %vm305_vm5, %v303_v17, %v304_v18  ;;  %p694_p5 = por %p693_p4, %p692_p3 }
  0xc6   : > { %v307_v20 = vrot.slane %v306_v19, 1  ;;  %p690_p2 = pneg %p689_p1 }
  0xc8   : > { %vm308_vm6 = vcmp.lt.s32.totalorder %v306_v19, %v307_v20  ;;  %p695_p6 = pnand %p694_p5, %p690_p2 }
  0xc9   : > { %v309_v21 = vsel %vm308_vm6, %v306_v19, %v307_v20 }
  0xca   : > { %319 = vst.msk [vmem:[%s264_s9] sm:$0x1] %vm317_vm2, %v309_v21 }
  0xcb   : > { %698 = shalt.err (!%p695_p6)
}
  0xcc   : > { %516 = dma.vmem_to_hbm [thread:$0]  (%p834_p9), %s364_s24, 16, %s366_s10, %s338_s11  }
  0xcd PF: > { %s377_s22 = sand.u32 1, %s741_s12   ;;  %p527_p7 = pnand %p500_p12, %p841_p11 }
  0xce   : > { %s378_s6 = scalar_lea.sflag [#allocation4], %s377_s22 }
  0xcf   : > { %p528_p8 = pneg %p527_p7 }
  0xd1   : > { %732 = dma.done.wait (%p528_p8), %s378_s6, 16  }
  0xd2   : > { %734 = vsyncadd (%p528_p8), %s378_s6, 4294967280  ;;  %s387_s7 = scalar_lea.sflag [#allocation9], %s377_s22 }
  0xd3   : > { %736 = dma.done.wait (%p528_p8), %s387_s7, 16  }
  0xd4   : > { %738 = vsyncadd (%p528_p8), %s387_s7, 4294967280  ;;  %s26_s17 = sadd.s32 1, %s761_s17   ;;  %s940_s12 = smov %s745_s13 }
  0xd5   : > { %p23_p10 = scmp.ge.s32.totalorder %s26_s17, 4   ;;  %s941_s13 = smov %s749_s14 }
  0xd6   : > { %s942_s14 = smov %s839_s26  ;;  %s943_s15 = smov %s757_s16 }
  0xd7   : > { %s944_s16 = smov %s946_s20  ;;  %25 = sbr.rel (!%p23_p10) target bundleno = 10 (0xa), region = 111 }
  0xdc   :  { %392 = vsyncpa [#allocation3], 1 }
  0xdd   :  { %394 = vsyncpa [#allocation3 + $0x1], 1 }
  0xde   :  { %395 = vsyncpa [#allocation6], 1 }
  0xdf   :  { %397 = vsyncpa [#allocation6 + $0x1], 1 }
  0xe0   :  { %398 = vsyncpa [#allocation4], 1 }
  0xe1   :  { %400 = vsyncpa [#allocation4 + $0x1], 1 }
  0xe2   :  { %401 = vsyncpa [#allocation9], 1 }
  0xe3   :  { %403 = vsyncpa [#allocation9 + $0x1], 1 }

</bundles_post_ra>
